<compile_context>
chip_gen: v6e
topology: v6e:2x2x1
jax: 0.10.0
libtpu: 0.0.40
codegen_flags: <defaults>
</compile_context>

<pallas_src>
import jax
import jax.numpy as jnp
from jax.experimental import pallas as pl
from jax.experimental.pallas import tpu as pltpu


def _fused_clone_kernel(pm_hbm, nm_hbm, pm_out, nm_out, sem):
    # Issue both whole-array HBM->HBM copies, then wait on both.  Starting the
    # second before waiting on the first overlaps the transfers (and keeps
    # both DMA queues busy on v7x); HBM bandwidth is the only ceiling.
    cp_p = pltpu.make_async_copy(pm_hbm, pm_out, sem.at[0])
    cp_n = pltpu.make_async_copy(nm_hbm, nm_out, sem.at[1])
    cp_p.start()
    cp_n.start()
    cp_p.wait()
    cp_n.wait()


def _single_clone_kernel(src_hbm, dst_hbm, sem):
    cp = pltpu.make_async_copy(src_hbm, dst_hbm, sem)
    cp.start()
    cp.wait()


def _dma_clone(x: jax.Array) -> jax.Array:
    """Single-mask clone: one whole-array HBM->HBM DMA (fallback path)."""
    if x.size == 0:
        return jnp.zeros(x.shape, x.dtype)
    return pl.pallas_call(
        _single_clone_kernel,
        out_shape=jax.ShapeDtypeStruct(x.shape, x.dtype),
        in_specs=[pl.BlockSpec(memory_space=pl.ANY)],
        out_specs=pl.BlockSpec(memory_space=pl.ANY),
        scratch_shapes=[pltpu.SemaphoreType.DMA(())],
    )(x)


def inner_masks_forward(pm: jax.Array, nm: jax.Array):
    """Pallas implementation of InnerMasks.forward(): (pm.clone(), nm.clone())."""
    if pm.size == 0 or nm.size == 0:
        # Degenerate empty masks: skip the fused kernel for the empty one(s).
        return _dma_clone(pm), _dma_clone(nm)

    return pl.pallas_call(
        _fused_clone_kernel,
        out_shape=(
            jax.ShapeDtypeStruct(pm.shape, pm.dtype),
            jax.ShapeDtypeStruct(nm.shape, nm.dtype),
        ),
        in_specs=[
            pl.BlockSpec(memory_space=pl.ANY),
            pl.BlockSpec(memory_space=pl.ANY),
        ],
        out_specs=(
            pl.BlockSpec(memory_space=pl.ANY),
            pl.BlockSpec(memory_space=pl.ANY),
        ),
        scratch_shapes=[pltpu.SemaphoreType.DMA((2,))],
    )(pm, nm)


if __name__ == "__main__":
    key = jax.random.PRNGKey(0)
    kp, kn = jax.random.split(key)

    # The module's two stored edge masks at small conv-mask-style shapes.
    pm = (jax.random.uniform(kp, (2, 4, 16, 16)) > 0.5).astype(jnp.float32)
    nm = (jax.random.uniform(kn, (2, 4, 16, 16)) > 0.5).astype(jnp.float32)

    out_p, out_n = inner_masks_forward(pm, nm)
    out_p, out_n = jax.block_until_ready((out_p, out_n))

    # Clone semantics: same shape/dtype/values, fresh buffers.
    assert out_p.shape == pm.shape and out_p.dtype == pm.dtype
    assert out_n.shape == nm.shape and out_n.dtype == nm.dtype
    assert bool(jnp.all(out_p == pm)) and bool(jnp.all(out_n == nm))

    # Extra sanity: arbitrary (non-128-multiple) 1-D edge masks and boolean
    # masks also go through the same DMA path with no reshape/packing.
    odd_p = jax.random.normal(jax.random.PRNGKey(1), (1234,), jnp.float32)
    odd_n = jax.random.normal(jax.random.PRNGKey(2), (999,), jnp.float32)
    oc_p, oc_n = jax.block_until_ready(inner_masks_forward(odd_p, odd_n))
    assert bool(jnp.all(oc_p == odd_p)) and bool(jnp.all(oc_n == odd_n))

    bool_p = jax.random.uniform(jax.random.PRNGKey(3), (2, 4, 16, 16)) > 0.5
    bool_n = jax.random.uniform(jax.random.PRNGKey(4), (2, 4, 16, 16)) > 0.5
    bc_p, bc_n = jax.block_until_ready(inner_masks_forward(bool_p, bool_n))
    assert bool(jnp.all(bc_p == bool_p)) and bool(jnp.all(bc_n == bool_n))

    print("KERNEL_OK")
</pallas_src>

<mosaic_0001>
module attributes {stable_mosaic.version = 11 : i64} {
  func.func @_fused_clone_kernel(%arg0: memref<2x4x16x16xf32, #tpu.memory_space<any>>, %arg1: memref<2x4x16x16xf32, #tpu.memory_space<any>>, %arg2: memref<2x4x16x16xf32, #tpu.memory_space<any>>, %arg3: memref<2x4x16x16xf32, #tpu.memory_space<any>>, %arg4: memref<2x!tpu.dma_semaphore, #tpu.memory_space<semaphore_mem>>) attributes {dimension_semantics = [], scalar_prefetch = 0 : i64, scratch_operands = 1 : i64, tpu.core_type = #tpu.core_type<tc>} {
    %c0_i32 = arith.constant 0 : i32
    %0 = tpu.memref_slice %arg4[%c0_i32] : memref<2x!tpu.dma_semaphore, #tpu.memory_space<semaphore_mem>> -> memref<1x!tpu.dma_semaphore, #tpu.memory_space<semaphore_mem>>
    %1 = tpu.memref_squeeze %0 : memref<1x!tpu.dma_semaphore, #tpu.memory_space<semaphore_mem>> -> memref<!tpu.dma_semaphore, #tpu.memory_space<semaphore_mem>>
    tpu.enqueue_dma source(%arg0 : memref<2x4x16x16xf32, #tpu.memory_space<any>>) target(%arg2 : memref<2x4x16x16xf32, #tpu.memory_space<any>>) target_semaphore(%1 : memref<!tpu.dma_semaphore, #tpu.memory_space<semaphore_mem>>)
    %c1_i32 = arith.constant 1 : i32
    %2 = tpu.memref_slice %arg4[%c1_i32] : memref<2x!tpu.dma_semaphore, #tpu.memory_space<semaphore_mem>> -> memref<1x!tpu.dma_semaphore, #tpu.memory_space<semaphore_mem>>
    %3 = tpu.memref_squeeze %2 : memref<1x!tpu.dma_semaphore, #tpu.memory_space<semaphore_mem>> -> memref<!tpu.dma_semaphore, #tpu.memory_space<semaphore_mem>>
    tpu.enqueue_dma source(%arg1 : memref<2x4x16x16xf32, #tpu.memory_space<any>>) target(%arg3 : memref<2x4x16x16xf32, #tpu.memory_space<any>>) target_semaphore(%3 : memref<!tpu.dma_semaphore, #tpu.memory_space<semaphore_mem>>)
    %c0_i32_0 = arith.constant 0 : i32
    %4 = tpu.memref_slice %arg4[%c0_i32_0] : memref<2x!tpu.dma_semaphore, #tpu.memory_space<semaphore_mem>> -> memref<1x!tpu.dma_semaphore, #tpu.memory_space<semaphore_mem>>
    %5 = tpu.memref_squeeze %4 : memref<1x!tpu.dma_semaphore, #tpu.memory_space<semaphore_mem>> -> memref<!tpu.dma_semaphore, #tpu.memory_space<semaphore_mem>>
    tpu.wait_dma2 semaphore(%5 : memref<!tpu.dma_semaphore, #tpu.memory_space<semaphore_mem>>) src(%arg0 : memref<2x4x16x16xf32, #tpu.memory_space<any>>) dst(%arg2 : memref<2x4x16x16xf32, #tpu.memory_space<any>>)
    %c1_i32_1 = arith.constant 1 : i32
    %6 = tpu.memref_slice %arg4[%c1_i32_1] : memref<2x!tpu.dma_semaphore, #tpu.memory_space<semaphore_mem>> -> memref<1x!tpu.dma_semaphore, #tpu.memory_space<semaphore_mem>>
    %7 = tpu.memref_squeeze %6 : memref<1x!tpu.dma_semaphore, #tpu.memory_space<semaphore_mem>> -> memref<!tpu.dma_semaphore, #tpu.memory_space<semaphore_mem>>
    tpu.wait_dma2 semaphore(%7 : memref<!tpu.dma_semaphore, #tpu.memory_space<semaphore_mem>>) src(%arg1 : memref<2x4x16x16xf32, #tpu.memory_space<any>>) dst(%arg3 : memref<2x4x16x16xf32, #tpu.memory_space<any>>)
    return
  }
}

</mosaic_0001>

<bundles_post_ra>
// kernel: tpu_custom_call.1
= control target key start
LH: loop header
LB: loop body
LE: loop exit
PB: predicated region body
PF: predicated region fallthrough
CT: control target
= control target key end

     0   :  { %s54_s12 = smov [#allocation2]   ;;  %s55_s13 = smov 131072   ;;  %s90_s0 = inlined_call_operand.hbm [shape: f32[2,4,16,16], index: 0, kind: input, shape index: {}]   ;;  %s91_s2 = inlined_call_operand.hbm [shape: f32[2,4,16,16], index: 2, kind: output, shape index: {0}]   ;;  %s92_s1 = inlined_call_operand.hbm [shape: f32[2,4,16,16], index: 1, kind: input, shape index: {}]   ;;  %s93_s3 = inlined_call_operand.hbm [shape: f32[2,4,16,16], index: 3, kind: output, shape index: {1}]  }
   0x1   :  { %s56_s14 = smov 0   ;;  %s57_s19 = smov [#allocation2 + $0x1]  }
   0x2   :  { %15 = dma.general %s90_s0, 2048, %s91_s2, %s54_s12, %s55_s13, [#allocation4], %s56_s14, 0  }
   0x3   :  { %23 = dma.general %s92_s1, 2048, %s93_s3, %s57_s19, %s55_s13, [#allocation6], %s56_s14, 0  }
   0x4   :  { %50 = dma.done.wait [#allocation2], 2048 }
   0x5   :  { %51 = vsyncadd [#allocation2], 4294965248 }
   0x6   :  { %52 = dma.done.wait [#allocation2 + $0x1], 2048 }
   0x7   :  { %53 = vsyncadd [#allocation2 + $0x1], 4294965248 }
   0x8   :  { %31 = vsyncmov [#allocation2] }
   0xb   :  { %s32_s24 = vpop.sfrf %31 }
   0xc   :  { %p44_p0 = scmp.ne.s32.totalorder %s32_s24, 0 }
   0xe   :  { %36 = shalt.err (%p44_p0)  }
   0xf   :  { %38 = vsyncmov [#allocation2 + $0x1] }
  0x12   :  { %s39_s25 = vpop.sfrf %38 }
  0x13   :  { %p45_p1 = scmp.ne.s32.totalorder %s39_s25, 0 }
  0x15   :  { %43 = shalt.err (%p45_p1)  }

</bundles_post_ra>
